<compile_context>
chip_gen: v5e
topology: v5e:2x2
jax: 0.10.0
libtpu: 0.0.40
codegen_flags: <defaults>
</compile_context>

<pallas_src>
import jax
import jax.numpy as jnp
from jax.experimental import pallas as pl
from jax.experimental.pallas import tpu as pltpu

NUM_CLASSES = 10
H1, H2 = 512, 256
H3_PAD = 128     # fc3 output padded 64  -> 128 (full MXU tile / full lanes)
OUT_PAD = 128    # fc4 output padded 10  -> 128 (lane-dense unmasked store)
NEG_PAD = -1e9   # padded logit columns get a huge negative bias (argmax-safe)


def _round_up(n, m):
    return ((n + m - 1) // m) * m


def mlp_kernel(x_ref, w1_ref, b1_ref, w2_ref, b2_ref,
               w3_ref, b3_ref, w4_ref, b4_ref, o_ref):
    # fc1 + ReLU  (bf16 operands on the MXU, f32 accumulation, f32 bias)
    h = jnp.dot(x_ref[...].astype(jnp.bfloat16), w1_ref[...],
                preferred_element_type=jnp.float32) + b1_ref[...]
    h = jnp.maximum(h, 0.0)
    # dropout(0.5) -> identity in eval mode
    # TODO(synk): training-mode dropout (pltpu.prng_random_bits mask + 1/(1-p) scale).
    # fc2 + ReLU
    h = jnp.dot(h.astype(jnp.bfloat16), w2_ref[...],
                preferred_element_type=jnp.float32) + b2_ref[...]
    h = jnp.maximum(h, 0.0)
    # fc3 + ReLU  (output columns zero-padded 64 -> 128; padded cols stay exactly 0)
    h = jnp.dot(h.astype(jnp.bfloat16), w3_ref[...],
                preferred_element_type=jnp.float32) + b3_ref[...]
    h = jnp.maximum(h, 0.0)
    # fc4 (no activation; columns 10..127 are padding, biased to NEG_PAD)
    h = jnp.dot(h.astype(jnp.bfloat16), w4_ref[...],
                preferred_element_type=jnp.float32) + b4_ref[...]
    o_ref[...] = h.astype(o_ref.dtype)   # bf16 store -> half the HBM writeback


def prepare_params(params, d_in_pad):
    """Pad fc1-K / fc3 / fc4 to MXU- and lane-dense shapes; cast weights to bf16."""
    w1, b1 = params["w1"], params["b1"]
    w2, b2 = params["w2"], params["b2"]
    w3, b3 = params["w3"], params["b3"]
    w4, b4 = params["w4"], params["b4"]
    # fc1 input rows padded so K is a multiple of 128 (zero rows contribute nothing).
    w1 = jnp.pad(w1, ((0, d_in_pad - w1.shape[0]), (0, 0)))
    # fc3 / fc4 outputs padded to full-lane widths.
    w3 = jnp.pad(w3, ((0, 0), (0, H3_PAD - w3.shape[1])))
    b3 = jnp.pad(b3, ((0, 0), (0, H3_PAD - b3.shape[1])))
    w4 = jnp.pad(w4, ((0, H3_PAD - w4.shape[0]), (0, OUT_PAD - w4.shape[1])))
    b4 = jnp.pad(b4, ((0, 0), (0, OUT_PAD - b4.shape[1])),
                 constant_values=NEG_PAD)
    bf16 = lambda w: w.astype(jnp.bfloat16)
    return {"w1": bf16(w1), "b1": b1, "w2": bf16(w2), "b2": b2,
            "w3": bf16(w3), "b3": b3, "w4": bf16(w4), "b4": b4}


def _pick_tile(B, tm):
    """Batch tile: multiple of 8 sublanes, capped at `tm`.  Ensure the grid has
    at least 2 steps when the batch is big enough (v7x has 2 TensorCores)."""
    TM = min(tm, _round_up(B, 8))
    if pl.cdiv(B, TM) < 2 and B >= 512:
        TM = _round_up(pl.cdiv(B, 2), 256)
    return TM


def animal_sound_classifier(x, params, *, tm=512):
    """x: (B, input_size) float32 (or bf16 if the producer emits it fused).
    Returns (B, NUM_CLASSES) bfloat16 logits."""
    B, d_in = x.shape
    D_pad = _round_up(d_in, 128)
    p = prepare_params(params, D_pad)

    TM = _pick_tile(B, tm)
    B_pad = pl.cdiv(B, TM) * TM
    if (B_pad, D_pad) != (B, d_in):
        x = jnp.pad(x, ((0, B_pad - B), (0, D_pad - d_in)))

    # Weights/biases: constant index_map (VMEM-resident across grid steps) and
    # single-buffered -- their blocks never change, so a second pipeline buffer
    # would be pure VMEM waste (matters most when input_size / w1 is large).
    const = lambda a: pl.BlockSpec(a.shape, lambda i: (0, 0),
                                   pipeline_mode=pl.Buffered(1))

    weight_bytes = sum(int(v.size) * v.dtype.itemsize for v in p.values())
    flops = 2 * B_pad * (D_pad * H1 + H1 * H2 + H2 * H3_PAD + H3_PAD * OUT_PAD)
    bytes_accessed = (int(x.size) * x.dtype.itemsize + weight_bytes
                      + B_pad * OUT_PAD * 2)

    # VMEM guard: only kicks in when input_size is large (double-buffered x tile
    # + weights would exceed the 24-32 MiB scoped default, relevant on v7x).
    est_vmem = (2 * TM * D_pad * x.dtype.itemsize      # x tile, double-buffered
                + weight_bytes                          # single-buffered weights
                + 2 * TM * OUT_PAD * 2)                 # bf16 out, double-buffered
    vmem_limit = None
    if est_vmem > 24 * 1024 * 1024:
        vmem_limit = min(int(est_vmem * 3 // 2) + (4 << 20), 96 * 1024 * 1024)
    # TODO(synk): for very large input_size, tile fc1's K with a second grid axis
    # instead of holding the full (TM, d_in) x tile in VMEM.

    out = pl.pallas_call(
        mlp_kernel,
        out_shape=jax.ShapeDtypeStruct((B_pad, OUT_PAD), jnp.bfloat16),
        grid=(B_pad // TM,),
        in_specs=[
            pl.BlockSpec((TM, D_pad), lambda i: (i, 0)),   # x: tiled over batch
            const(p["w1"]), const(p["b1"]),
            const(p["w2"]), const(p["b2"]),
            const(p["w3"]), const(p["b3"]),
            const(p["w4"]), const(p["b4"]),
        ],
        out_specs=pl.BlockSpec((TM, OUT_PAD), lambda i: (i, 0)),
        compiler_params=pltpu.CompilerParams(
            dimension_semantics=("parallel",),           # megacore split on v7x
            vmem_limit_bytes=vmem_limit),
        cost_estimate=pl.CostEstimate(
            flops=flops, transcendentals=0, bytes_accessed=bytes_accessed),
    )(x, p["w1"], p["b1"], p["w2"], p["b2"],
      p["w3"], p["b3"], p["w4"], p["b4"])

    # Padded columns are biased to NEG_PAD, so an argmax on the padded block
    # would also be correct; here we return the real classes only.
    return out[:B, :NUM_CLASSES]


def init_params(key, input_size):
    """Deterministic init mimicking nn.Linear's U(-1/sqrt(fan_in), 1/sqrt(fan_in))."""
    dims = [input_size, H1, H2, 64, NUM_CLASSES]
    params = {}
    for i in range(4):
        fan_in, fan_out = dims[i], dims[i + 1]
        key, kw, kb = jax.random.split(key, 3)
        bound = 1.0 / jnp.sqrt(jnp.float32(fan_in))
        params[f"w{i+1}"] = jax.random.uniform(
            kw, (fan_in, fan_out), jnp.float32, -bound, bound)
        params[f"b{i+1}"] = jax.random.uniform(
            kb, (1, fan_out), jnp.float32, -bound, bound)
    return params


def reference_forward(x, params):
    """Pure-JAX reference mimicking the kernel's numerics: bf16 weights/activations
    into each matmul, f32 accumulation, f32 biases (f32 result)."""
    def dense(h, w, b, relu):
        y = jnp.dot(h.astype(jnp.bfloat16), w.astype(jnp.bfloat16),
                    preferred_element_type=jnp.float32) + b
        return jnp.maximum(y, 0.0) if relu else y
    h = dense(x, params["w1"], params["b1"], True)
    h = dense(h, params["w2"], params["b2"], True)
    h = dense(h, params["w3"], params["b3"], True)
    return dense(h, params["w4"], params["b4"], False)


if __name__ == "__main__":
    key = jax.random.PRNGKey(0)
    key, kx = jax.random.split(key)

    batch = 8
    input_size = 128
    x = jax.random.normal(kx, (batch, input_size), dtype=jnp.float32)
    params = init_params(key, input_size)

    out = animal_sound_classifier(x, params)
    out = jax.block_until_ready(out)

    ref = reference_forward(x, params)
    assert out.shape == (batch, NUM_CLASSES), out.shape
    assert out.dtype == jnp.bfloat16, out.dtype
    # Kernel output is bf16 (writeback optimization); allow bf16 rounding slack.
    assert jnp.allclose(out.astype(jnp.float32), ref, atol=3e-2, rtol=3e-2), \
        "mismatch vs reference"

    print("KERNEL_OK")
</pallas_src>

<mosaic_0001>
module attributes {stable_mosaic.version = 11 : i64} {
  func.func @mlp_kernel(%arg0: i32, %arg1: memref<8x128xf32, #tpu.memory_space<vmem>>, %arg2: memref<128x512xbf16, #tpu.memory_space<vmem>>, %arg3: memref<1x512xf32, #tpu.memory_space<vmem>>, %arg4: memref<512x256xbf16, #tpu.memory_space<vmem>>, %arg5: memref<1x256xf32, #tpu.memory_space<vmem>>, %arg6: memref<256x128xbf16, #tpu.memory_space<vmem>>, %arg7: memref<1x128xf32, #tpu.memory_space<vmem>>, %arg8: memref<128x128xbf16, #tpu.memory_space<vmem>>, %arg9: memref<1x128xf32, #tpu.memory_space<vmem>>, %arg10: memref<8x128xbf16, #tpu.memory_space<vmem>>) attributes {dimension_semantics = [#tpu.dimension_semantics<parallel>], iteration_bounds = array<i64: 1>, scalar_prefetch = 0 : i64, scratch_operands = 0 : i64, tpu.core_type = #tpu.core_type<tc>, window_params = [{transform_indices = @transform_0, window_bounds = array<i64: 8, 128>}, {pipeline_mode = #tpu.pipeline_mode<synchronous>, transform_indices = @transform_1, window_bounds = array<i64: 128, 512>}, {pipeline_mode = #tpu.pipeline_mode<synchronous>, transform_indices = @transform_2, window_bounds = array<i64: 1, 512>}, {pipeline_mode = #tpu.pipeline_mode<synchronous>, transform_indices = @transform_3, window_bounds = array<i64: 512, 256>}, {pipeline_mode = #tpu.pipeline_mode<synchronous>, transform_indices = @transform_4, window_bounds = array<i64: 1, 256>}, {pipeline_mode = #tpu.pipeline_mode<synchronous>, transform_indices = @transform_5, window_bounds = array<i64: 256, 128>}, {pipeline_mode = #tpu.pipeline_mode<synchronous>, transform_indices = @transform_6, window_bounds = array<i64: 1, 128>}, {pipeline_mode = #tpu.pipeline_mode<synchronous>, transform_indices = @transform_7, window_bounds = array<i64: 128, 128>}, {pipeline_mode = #tpu.pipeline_mode<synchronous>, transform_indices = @transform_8, window_bounds = array<i64: 1, 128>}, {transform_indices = @transform_9, window_bounds = array<i64: 8, 128>}]} {
    %c0 = arith.constant 0 : index
    %c0_0 = arith.constant 0 : index
    %0 = vector.load %arg1[%c0, %c0_0] : memref<8x128xf32, #tpu.memory_space<vmem>>, vector<8x128xf32>
    %1 = arith.truncf %0 : vector<8x128xf32> to vector<8x128xbf16>
    %c0_1 = arith.constant 0 : index
    %c0_2 = arith.constant 0 : index
    %2 = vector.load %arg2[%c0_1, %c0_2] : memref<128x512xbf16, #tpu.memory_space<vmem>>, vector<128x512xbf16>
    %cst = arith.constant dense<0.000000e+00> : vector<8x512xf32>
    %3 = tpu.matmul %1, %2, %cst {dimension_numbers = #tpu.dot_dimension_numbers<[1], [0], [0], [1], [0, 0, 1, 1], [], []>} : vector<8x128xbf16>, vector<128x512xbf16>, vector<8x512xf32> -> vector<8x512xf32>
    %c0_3 = arith.constant 0 : index
    %c0_4 = arith.constant 0 : index
    %4 = vector.load %arg3[%c0_3, %c0_4] : memref<1x512xf32, #tpu.memory_space<vmem>>, vector<1x512xf32>
    %5 = vector.broadcast %4 : vector<1x512xf32> to vector<8x512xf32>
    %6 = arith.addf %3, %5 : vector<8x512xf32>
    %cst_5 = arith.constant 0.000000e+00 : f32
    %7 = vector.broadcast %cst_5 : f32 to vector<8x512xf32>
    %8 = arith.maximumf %6, %7 : vector<8x512xf32>
    %9 = arith.truncf %8 : vector<8x512xf32> to vector<8x512xbf16>
    %c0_6 = arith.constant 0 : index
    %c0_7 = arith.constant 0 : index
    %10 = vector.load %arg4[%c0_6, %c0_7] : memref<512x256xbf16, #tpu.memory_space<vmem>>, vector<512x256xbf16>
    %cst_8 = arith.constant dense<0.000000e+00> : vector<8x256xf32>
    %11 = tpu.matmul %9, %10, %cst_8 {dimension_numbers = #tpu.dot_dimension_numbers<[1], [0], [0], [1], [0, 0, 1, 1], [], []>} : vector<8x512xbf16>, vector<512x256xbf16>, vector<8x256xf32> -> vector<8x256xf32>
    %c0_9 = arith.constant 0 : index
    %c0_10 = arith.constant 0 : index
    %12 = vector.load %arg5[%c0_9, %c0_10] : memref<1x256xf32, #tpu.memory_space<vmem>>, vector<1x256xf32>
    %13 = vector.broadcast %12 : vector<1x256xf32> to vector<8x256xf32>
    %14 = arith.addf %11, %13 : vector<8x256xf32>
    %cst_11 = arith.constant 0.000000e+00 : f32
    %15 = vector.broadcast %cst_11 : f32 to vector<8x256xf32>
    %16 = arith.maximumf %14, %15 : vector<8x256xf32>
    %17 = arith.truncf %16 : vector<8x256xf32> to vector<8x256xbf16>
    %c0_12 = arith.constant 0 : index
    %c0_13 = arith.constant 0 : index
    %18 = vector.load %arg6[%c0_12, %c0_13] : memref<256x128xbf16, #tpu.memory_space<vmem>>, vector<256x128xbf16>
    %cst_14 = arith.constant dense<0.000000e+00> : vector<8x128xf32>
    %19 = tpu.matmul %17, %18, %cst_14 {dimension_numbers = #tpu.dot_dimension_numbers<[1], [0], [0], [1], [0, 0, 1, 1], [], []>} : vector<8x256xbf16>, vector<256x128xbf16>, vector<8x128xf32> -> vector<8x128xf32>
    %c0_15 = arith.constant 0 : index
    %c0_16 = arith.constant 0 : index
    %20 = vector.load %arg7[%c0_15, %c0_16] : memref<1x128xf32, #tpu.memory_space<vmem>>, vector<1x128xf32>
    %21 = vector.broadcast %20 : vector<1x128xf32> to vector<8x128xf32>
    %22 = arith.addf %19, %21 : vector<8x128xf32>
    %cst_17 = arith.constant 0.000000e+00 : f32
    %23 = vector.broadcast %cst_17 : f32 to vector<8x128xf32>
    %24 = arith.maximumf %22, %23 : vector<8x128xf32>
    %25 = arith.truncf %24 : vector<8x128xf32> to vector<8x128xbf16>
    %c0_18 = arith.constant 0 : index
    %c0_19 = arith.constant 0 : index
    %26 = vector.load %arg8[%c0_18, %c0_19] : memref<128x128xbf16, #tpu.memory_space<vmem>>, vector<128x128xbf16>
    %cst_20 = arith.constant dense<0.000000e+00> : vector<8x128xf32>
    %27 = tpu.matmul %25, %26, %cst_20 {dimension_numbers = #tpu.dot_dimension_numbers<[1], [0], [0], [1], [0, 0, 1, 1], [], []>} : vector<8x128xbf16>, vector<128x128xbf16>, vector<8x128xf32> -> vector<8x128xf32>
    %c0_21 = arith.constant 0 : index
    %c0_22 = arith.constant 0 : index
    %28 = vector.load %arg9[%c0_21, %c0_22] : memref<1x128xf32, #tpu.memory_space<vmem>>, vector<1x128xf32>
    %29 = vector.broadcast %28 : vector<1x128xf32> to vector<8x128xf32>
    %30 = arith.addf %27, %29 : vector<8x128xf32>
    %31 = arith.truncf %30 : vector<8x128xf32> to vector<8x128xbf16>
    %c0_23 = arith.constant 0 : index
    %c0_24 = arith.constant 0 : index
    %32 = vector.load %arg10[%c0_23, %c0_24] : memref<8x128xbf16, #tpu.memory_space<vmem>>, vector<8x128xbf16>
    tpu.vector_store %arg10[%c0_23, %c0_24], %31 {strides = array<i32>} : memref<8x128xbf16, #tpu.memory_space<vmem>>, vector<8x128xbf16>,
    return
  }
  func.func @transform_0(%arg0: i32) -> (i32, i32) {
    %c0_i32 = arith.constant 0 : i32
    %c0_i32_0 = arith.constant 0 : i32
    return %arg0, %c0_i32 : i32, i32
  }
  func.func @transform_1(%arg0: i32) -> (i32, i32) {
    %c0_i32 = arith.constant 0 : i32
    %c0_i32_0 = arith.constant 0 : i32
    %c0_i32_1 = arith.constant 0 : i32
    return %c0_i32, %c0_i32_0 : i32, i32
  }
  func.func @transform_2(%arg0: i32) -> (i32, i32) {
    %c0_i32 = arith.constant 0 : i32
    %c0_i32_0 = arith.constant 0 : i32
    %c0_i32_1 = arith.constant 0 : i32
    return %c0_i32, %c0_i32_0 : i32, i32
  }
  func.func @transform_3(%arg0: i32) -> (i32, i32) {
    %c0_i32 = arith.constant 0 : i32
    %c0_i32_0 = arith.constant 0 : i32
    %c0_i32_1 = arith.constant 0 : i32
    return %c0_i32, %c0_i32_0 : i32, i32
  }
  func.func @transform_4(%arg0: i32) -> (i32, i32) {
    %c0_i32 = arith.constant 0 : i32
    %c0_i32_0 = arith.constant 0 : i32
    %c0_i32_1 = arith.constant 0 : i32
    return %c0_i32, %c0_i32_0 : i32, i32
  }
  func.func @transform_5(%arg0: i32) -> (i32, i32) {
    %c0_i32 = arith.constant 0 : i32
    %c0_i32_0 = arith.constant 0 : i32
    %c0_i32_1 = arith.constant 0 : i32
    return %c0_i32, %c0_i32_0 : i32, i32
  }
  func.func @transform_6(%arg0: i32) -> (i32, i32) {
    %c0_i32 = arith.constant 0 : i32
    %c0_i32_0 = arith.constant 0 : i32
    %c0_i32_1 = arith.constant 0 : i32
    return %c0_i32, %c0_i32_0 : i32, i32
  }
  func.func @transform_7(%arg0: i32) -> (i32, i32) {
    %c0_i32 = arith.constant 0 : i32
    %c0_i32_0 = arith.constant 0 : i32
    %c0_i32_1 = arith.constant 0 : i32
    return %c0_i32, %c0_i32_0 : i32, i32
  }
  func.func @transform_8(%arg0: i32) -> (i32, i32) {
    %c0_i32 = arith.constant 0 : i32
    %c0_i32_0 = arith.constant 0 : i32
    %c0_i32_1 = arith.constant 0 : i32
    return %c0_i32, %c0_i32_0 : i32, i32
  }
  func.func @transform_9(%arg0: i32) -> (i32, i32) {
    %c0_i32 = arith.constant 0 : i32
    %c0_i32_0 = arith.constant 0 : i32
    return %arg0, %c0_i32 : i32, i32
  }
}

</mosaic_0001>

<bundles_post_ra>
// kernel: tpu_custom_call.1
= control target key start
LH: loop header
LB: loop body
LE: loop exit
PB: predicated region body
PF: predicated region fallthrough
CT: control target
= control target key end

     0   :  { %14 = vsyncpa [#allocation3], 0  ;;  %s2034_s0 = inlined_call_operand.hbm [shape: f32[8,128], index: 0, kind: input, shape index: {}]   ;;  %s2035_s1 = inlined_call_operand.hbm [shape: bf16[128,512], index: 1, kind: input, shape index: {}]   ;;  %s2036_s2 = inlined_call_operand.hbm [shape: f32[1,512], index: 2, kind: input, shape index: {}]   ;;  %s2037_s3 = inlined_call_operand.hbm [shape: bf16[512,256], index: 3, kind: input, shape index: {}]   ;;  %s2038_s4 = inlined_call_operand.vmem [shape: f32[1,256], index: 4, kind: input, shape index: {}]   ;;  %s2039_s5 = inlined_call_operand.hbm [shape: bf16[256,128], index: 5, kind: input, shape index: {}]   ;;  %s2040_s6 = inlined_call_operand.vmem [shape: f32[1,128], index: 6, kind: input, shape index: {}]   ;;  %s2041_s7 = inlined_call_operand.hbm [shape: bf16[128,128], index: 7, kind: input, shape index: {}]   ;;  %s2042_s8 = inlined_call_operand.vmem [shape: f32[1,128], index: 8, kind: input, shape index: {}]   ;;  %s2043_s9 = inlined_call_operand.hbm [shape: bf16[8,128], index: 9, kind: output, shape index: {}]  }
   0x1   :  { %15 = vsyncpa [#allocation6], 0 }
   0x2   :  { %16 = vsyncpa [#allocation9], 0 }
   0x3   :  { %17 = vsyncpa [#allocation12], 0  ;;  %s34_s11 = sshll.u32 %s2035_s1, 4  ;;  %s35_s11 = int_to_ptr.hbm [resolvable:$true] %s34_s11 }
   0x4   :  { %18 = vsyncpa [#allocation4], 0  ;;  %s1941_s12 = smov [#allocation5]   ;;  %s58_s16 = sshll.u32 %s2037_s3, 4  ;;  %s59_s16 = int_to_ptr.hbm [resolvable:$true] %s58_s16 }
   0x5   :  { %s36_s13 = sshll.u32 %s1941_s12, 4  ;;  %s1942_s17 = smov 256   ;;  %s37_s13 = int_to_ptr.vmem [resolvable:$true] %s36_s13 }
   0x6   :  { %s1943_s18 = smov 16   ;;  %s1944_s19 = smov [#allocation8]  }
   0x7   :  { %42 = dma.hbm_to_vmem [thread:$0]  %s35_s11, 4096, %s37_s13, [#allocation6], %s1942_s17, %s1942_s17, %s1943_s18  }
   0x8   :  { %s60_s20 = sshll.u32 %s1944_s19, 4  ;;  %s1945_s21 = smov 128   ;;  %s61_s20 = int_to_ptr.vmem [resolvable:$true] %s60_s20 }
   0x9   :  { %s1946_s22 = smov 8   ;;  %s24_s24 = sshll.u32 %s2034_s0, 4  ;;  %s25_s24 = int_to_ptr.hbm [resolvable:$true] %s24_s24 }
   0xa   :  { %66 = dma.hbm_to_vmem [thread:$0]  %s59_s16, 8192, %s61_s20, [#allocation9], %s1945_s21, %s1945_s21, %s1946_s22  }
   0xb   :  { %s1947_s25 = smov [#allocation2]   ;;  %s48_s28 = sshll.u32 %s2036_s2, 4  ;;  %s49_s28 = int_to_ptr.hbm [resolvable:$true] %s48_s28 }
   0xc   :  { %s26_s26 = sshll.u32 %s1947_s25, 4  ;;  %s1948_s29 = smov [#allocation7]   ;;  %s27_s26 = int_to_ptr.vmem [resolvable:$true] %s26_s26 }
   0xd   :  { %29 = dma.hbm_to_vmem [thread:$0]  %s25_s24, 128, %s27_s26, [#allocation3]  }
   0xe   :  { %s50_s30 = sshll.u32 %s1948_s29, 4  ;;  %s73_s12 = sshll.u32 %s2039_s5, 4  ;;  %s51_s30 = int_to_ptr.vmem [resolvable:$true] %s50_s30  ;;  %s74_s12 = int_to_ptr.hbm [resolvable:$true] %s73_s12 }
   0xf   :  { %53 = dma.hbm_to_vmem [thread:$0]  %s49_s28, 64, %s51_s30, [#allocation6]  }
  0x10   :  { %s1949_s0 = smov [#allocation10]   ;;  %s88_s16 = sshll.u32 %s2041_s7, 4  ;;  %s89_s16 = int_to_ptr.hbm [resolvable:$true] %s88_s16 }
  0x11   :  { %s75_s13 = sshll.u32 %s1949_s0, 4  ;;  %s1950_s17 = smov 64   ;;  %s76_s13 = int_to_ptr.vmem [resolvable:$true] %s75_s13 }
  0x12   :  { %s1951_s2 = smov 4   ;;  %s1952_s18 = smov [#allocation11]  }
  0x13   :  { %81 = dma.hbm_to_vmem [thread:$0]  %s74_s12, 2048, %s76_s13, [#allocation9], %s1950_s17, %s1950_s17, %s1951_s2  }
  0x14   :  { %s90_s19 = sshll.u32 %s1952_s18, 4  ;;  %s91_s19 = int_to_ptr.vmem [resolvable:$true] %s90_s19 }
  0x15   :  { %96 = dma.hbm_to_vmem [thread:$0]  %s89_s16, 1024, %s91_s19, [#allocation12], %s1950_s17, %s1950_s17, %s1951_s2  }
  0x16   :  { %1931 = dma.done.wait [#allocation3], 128  }
  0x17   :  { %1932 = vsyncadd [#allocation3], 4294967168 }
  0x18   :  { %1933 = dma.done.wait [#allocation6], 4160  }
  0x19   :  { %1934 = vsyncadd [#allocation6], 4294963136 }
  0x1a   :  { %1935 = dma.done.wait [#allocation9], 10240  }
  0x1b   :  { %1936 = vsyncadd [#allocation9], 4294957056 }
  0x1c   :  { %1937 = dma.done.wait [#allocation12], 1024  }
  0x1d   :  { %1938 = vsyncadd [#allocation12], 4294966272  ;;  %v1262_v0 = vld [vmem:[#allocation5 + $0xe0] sm:$0xf]  ;;  %v1658_v1 = vld [vmem:[#allocation5 + $0xec] sm:$0xf0] }
  0x1e   :  { %v1656_v2 = vld [vmem:[#allocation5 + $0xe4] sm:$0xf]  ;;  %v1263_v3 = vor.u32 %v1658_v1, %v1262_v0  ;;  %v1264_v4 = vld [vmem:[#allocation5 + $0xf0] sm:$0xf0]  ;;  %v1270_v5 = vld [vmem:[#allocation5 + $0xe8] sm:$0xf] }
  0x1f   :  { %v1659_v6 = vld [vmem:[#allocation5 + $0xf4] sm:$0xf0]  ;;  %v1267_v7 = vor.u32 %v1656_v2, %v1264_v4  ;;  %v1657_v9 = vld [vmem:[#allocation5 + $0xec] sm:$0xf]  ;;  %v1272_v10 = vld [vmem:[#allocation5 + $0xf8] sm:$0xf0] }
  0x20   :  { %v1271_v8 = vor.u32 %v1659_v6, %v1270_v5  ;;  %v1246_v11 = vld [vmem:[#allocation5 + $0xc0] sm:$0xf]  ;;  %327 = vmatpush.bf16.msra.mxu0 %v1263_v3  ;;  %v1275_v12 = vor.u32 %v1657_v9, %v1272_v10  ;;  %v1654_v13 = vld [vmem:[#allocation5 + $0xcc] sm:$0xf0]  ;;  %v1652_v14 = vld [vmem:[#allocation5 + $0xc4] sm:$0xf] }
  0x21   :  { %v1248_v15 = vld [vmem:[#allocation5 + $0xd0] sm:$0xf0]  ;;  %340 = vmatpush.bf16.msra.mxu1 %v1267_v7  ;;  %v1247_v16 = vor.u32 %v1654_v13, %v1246_v11  ;;  %v1254_v18 = vld [vmem:[#allocation5 + $0xc8] sm:$0xf]  ;;  %v1655_v19 = vld [vmem:[#allocation5 + $0xd4] sm:$0xf0] }
  0x22   :  { %353 = vmatpush.bf16.msra.mxu2 %v1271_v8  ;;  %v1251_v17 = vor.u32 %v1652_v14, %v1248_v15  ;;  %v1653_v20 = vld [vmem:[#allocation5 + $0xcc] sm:$0xf]  ;;  %366 = vmatpush.bf16.msra.mxu3 %v1275_v12  ;;  %v1255_v21 = vor.u32 %v1655_v19, %v1254_v18  ;;  %v1256_v22 = vld [vmem:[#allocation5 + $0xd8] sm:$0xf0]  ;;  %v1230_v23 = vld [vmem:[#allocation5 + $0xa0] sm:$0xf] }
  0x23   :  { %v1650_v24 = vld [vmem:[#allocation5 + $0xac] sm:$0xf0]  ;;  %v1259_v25 = vor.u32 %v1653_v20, %v1256_v22  ;;  %v1648_v26 = vld [vmem:[#allocation5 + $0xa4] sm:$0xf]  ;;  %v1232_v27 = vld [vmem:[#allocation5 + $0xb0] sm:$0xf0] }
  0x24   :  { %v1238_v28 = vld [vmem:[#allocation5 + $0xa8] sm:$0xf]  ;;  %328 = vmatpush.bf16.msra.mxu0 %v1247_v16  ;;  %v1231_v29 = vor.u32 %v1650_v24, %v1230_v23  ;;  %v1651_v30 = vld [vmem:[#allocation5 + $0xb4] sm:$0xf0]  ;;  %v1649_v31 = vld [vmem:[#allocation5 + $0xac] sm:$0xf]  ;;  %v1235_v33 = vor.u32 %v1648_v26, %v1232_v27 }
  0x25   :  { %v1240_v32 = vld [vmem:[#allocation5 + $0xb8] sm:$0xf0]  ;;  %341 = vmatpush.bf16.msra.mxu1 %v1251_v17  ;;  %v1239_v34 = vor.u32 %v1651_v30, %v1238_v28  ;;  %v1214_v35 = vld [vmem:[#allocation5 + $0x80] sm:$0xf]  ;;  %v1646_v36 = vld [vmem:[#allocation5 + $0x8c] sm:$0xf0] }
  0x26   :  { %354 = vmatpush.bf16.msra.mxu2 %v1255_v21  ;;  %v1644_v37 = vld [vmem:[#allocation5 + $0x84] sm:$0xf]  ;;  %367 = vmatpush.bf16.msra.mxu3 %v1259_v25  ;;  %v1243_v38 = vor.u32 %v1649_v31, %v1240_v32  ;;  %v1216_v39 = vld [vmem:[#allocation5 + $0x90] sm:$0xf0]  ;;  %v1222_v40 = vld [vmem:[#allocation5 + $0x88] sm:$0xf]  ;;  %v1215_v44 = vor.u32 %v1646_v36, %v1214_v35 }
  0x27   :  { %v1647_v41 = vld [vmem:[#allocation5 + $0x94] sm:$0xf0]  ;;  %v1645_v42 = vld [vmem:[#allocation5 + $0x8c] sm:$0xf]  ;;  %v1224_v43 = vld [vmem:[#allocation5 + $0x98] sm:$0xf0]  ;;  %v1219_v45 = vor.u32 %v1644_v37, %v1216_v39 }
  0x28   :  { %329 = vmatpush.bf16.msra.mxu0 %v1231_v29  ;;  %v1223_v46 = vor.u32 %v1647_v41, %v1222_v40  ;;  %v1198_v47 = vld [vmem:[#allocation5 + $0x60] sm:$0xf]  ;;  %v1642_v48 = vld [vmem:[#allocation5 + $0x6c] sm:$0xf0]  ;;  %v1640_v49 = vld [vmem:[#allocation5 + $0x64] sm:$0xf]  ;;  %v1227_v50 = vor.u32 %v1645_v42, %v1224_v43 }
  0x29   :  { %342 = vmatpush.bf16.msra.mxu1 %v1235_v33  ;;  %v1200_v51 = vld [vmem:[#allocation5 + $0x70] sm:$0xf0]  ;;  %v1206_v52 = vld [vmem:[#allocation5 + $0x68] sm:$0xf]  ;;  %v1643_v53 = vld [vmem:[#allocation5 + $0x74] sm:$0xf0]  ;;  %v1199_v56 = vor.u32 %v1642_v48, %v1198_v47 }
  0x2a   :  { %355 = vmatpush.bf16.msra.mxu2 %v1239_v34  ;;  %368 = vmatpush.bf16.msra.mxu3 %v1243_v38  ;;  %v1641_v54 = vld [vmem:[#allocation5 + $0x6c] sm:$0xf]  ;;  %v1208_v55 = vld [vmem:[#allocation5 + $0x78] sm:$0xf0]  ;;  %v1203_v57 = vor.u32 %v1640_v49, %v1200_v51  ;;  %v1207_v58 = vor.u32 %v1643_v53, %v1206_v52  ;;  %v1182_v59 = vld [vmem:[#allocation5 + $0x40] sm:$0xf] }
  0x2b   :  { %v1638_v60 = vld [vmem:[#allocation5 + $0x4c] sm:$0xf0]  ;;  %v1636_v61 = vld [vmem:[#allocation5 + $0x44] sm:$0xf]  ;;  %v1211_v62 = vor.u32 %v1641_v54, %v1208_v55  ;;  %v1184_v63 = vld [vmem:[#allocation5 + $0x50] sm:$0xf0] }
  0x2c   :  { %330 = vmatpush.bf16.msra.mxu0 %v1215_v44  ;;  %v1190_v0 = vld [vmem:[#allocation5 + $0x48] sm:$0xf]  ;;  %v1639_v1 = vld [vmem:[#allocation5 + $0x54] sm:$0xf0]  ;;  %v1637_v2 = vld [vmem:[#allocation5 + $0x4c] sm:$0xf]  ;;  %v1183_v4 = vor.u32 %v1638_v60, %v1182_v59  ;;  %v1187_v5 = vor.u32 %v1636_v61, %v1184_v63 }
  0x2d   :  { %343 = vmatpush.bf16.msra.mxu1 %v1219_v45  ;;  %v1192_v3 = vld [vmem:[#allocation5 + $0x58] sm:$0xf0]  ;;  %v1191_v6 = vor.u32 %v1639_v1, %v1190_v0  ;;  %v1166_v7 = vld [vmem:[#allocation5 + $0x20] sm:$0xf]  ;;  %v1634_v8 = vld [vmem:[#allocation5 + $0x2c] sm:$0xf0] }
  0x2e   :  { %356 = vmatpush.bf16.msra.mxu2 %v1223_v46  ;;  %369 = vmatpush.bf16.msra.mxu3 %v1227_v50  ;;  %v1632_v9 = vld [vmem:[#allocation5 + $0x24] sm:$0xf]  ;;  %v1195_v10 = vor.u32 %v1637_v2, %v1192_v3  ;;  %v1168_v11 = vld [vmem:[#allocation5 + $0x30] sm:$0xf0]  ;;  %v1174_v12 = vld [vmem:[#allocation5 + $0x28] sm:$0xf]  ;;  %v1167_v16 = vor.u32 %v1634_v8, %v1166_v7 }
  0x2f   :  { %v1635_v13 = vld [vmem:[#allocation5 + $0x34] sm:$0xf0]  ;;  %v1633_v14 = vld [vmem:[#allocation5 + $0x2c] sm:$0xf]  ;;  %v1176_v15 = vld [vmem:[#allocation5 + $0x38] sm:$0xf0]  ;;  %v1171_v18 = vor.u32 %v1632_v9, %v1168_v11 }
  0x30   :  { %331 = vmatpush.bf16.msra.mxu0 %v1199_v56  ;;  %v1150_v17 = vld [vmem:[#allocation5] sm:$0xf]  ;;  %v1175_v19 = vor.u32 %v1635_v13, %v1174_v12  ;;  %v1630_v20 = vld [vmem:[#allocation5 + $0xc] sm:$0xf0]  ;;  %v1628_v21 = vld [vmem:[#allocation5 + $0x4] sm:$0xf]  ;;  %v1179_v23 = vor.u32 %v1633_v14, %v1176_v15 }
  0x31   :  { %344 = vmatpush.bf16.msra.mxu1 %v1203_v57  ;;  %v1152_v22 = vld [vmem:[#allocation5 + $0x10] sm:$0xf0]  ;;  %v1158_v24 = vld [vmem:[#allocation5 + $0x8] sm:$0xf]  ;;  %v1631_v25 = vld [vmem:[#allocation5 + $0x14] sm:$0xf0]  ;;  %v1151_v30 = vor.u32 %v1630_v20, %v1150_v17 }
  0x32   :  { %357 = vmatpush.bf16.msra.mxu2 %v1207_v58  ;;  %370 = vmatpush.bf16.msra.mxu3 %v1211_v62  ;;  %v1629_v26 = vld [vmem:[#allocation5 + $0xc] sm:$0xf]  ;;  %v1160_v27 = vld [vmem:[#allocation5 + $0x18] sm:$0xf0]  ;;  %v1334_v28 = vld [vmem:[#allocation8 + $0x70] sm:$0xf]  ;;  %v1155_v34 = vor.u32 %v1628_v21, %v1152_v22  ;;  %v1159_v35 = vor.u32 %v1631_v25, %v1158_v24 }
  0x33   :  { %v1675_v29 = vld [vmem:[#allocation8 + $0x74] sm:$0xf0]  ;;  %v1398_v32 = vld [vmem:[#allocation8 + $0xf0] sm:$0xf]  ;;  %v1163_v36 = vor.u32 %v1629_v26, %v1160_v27  ;;  %v1326_v38 = vld [vmem:[#allocation8 + $0x60] sm:$0xf] }
  0x34   :  { %332 = vmatpush.bf16.msra.mxu0 %v1183_v4  ;;  %v123_v31 = vld [vmem:[#allocation2] sm:$0xff]  ;;  %v1335_v37 = vor.u32 %v1675_v29, %v1334_v28  ;;  %v1462_v39 = vld [vmem:[#allocation8 + $0x170] sm:$0xf]  ;;  %v1673_v43 = vld [vmem:[#allocation8 + $0x64] sm:$0xf0]  ;;  %s1953_s1 = smov [#allocation13]  }
  0x35   :  { %345 = vmatpush.bf16.msra.mxu1 %v1187_v5  ;;  %v1691_v33 = vld [vmem:[#allocation8 + $0xf4] sm:$0xf0]  ;;  %v124_v41 = vpack.c.bf16 %v123_v31, %v123_v31  ;;  %v1526_v44 = vld [vmem:[#allocation8 + $0x1f0] sm:$0xf]  ;;  %v1390_v46 = vld [vmem:[#allocation8 + $0xe0] sm:$0xf]  ;;  %v1327_v49 = vor.u32 %v1673_v43, %v1326_v38 }
  0x36   :  { %358 = vmatpush.bf16.msra.mxu2 %v1191_v6  ;;  %371 = vmatpush.bf16.msra.mxu3 %v1195_v10  ;;  %v1707_v40 = vld [vmem:[#allocation8 + $0x174] sm:$0xf0]  ;;  %v1399_v42 = vor.u32 %v1691_v33, %v1398_v32  ;;  %v1689_v47 = vld [vmem:[#allocation8 + $0xe4] sm:$0xf0]  ;;  %v1318_v51 = vld [vmem:[#allocation8 + $0x50] sm:$0xf] }
  0x37   :  { %v1723_v45 = vld [vmem:[#allocation8 + $0x1f4] sm:$0xf0]  ;;  %v1463_v48 = vor.u32 %v1707_v40, %v1462_v39  ;;  %v1454_v52 = vld [vmem:[#allocation8 + $0x160] sm:$0xf]  ;;  %v1705_v53 = vld [vmem:[#allocation8 + $0x164] sm:$0xf0]  ;;  %v1391_v54 = vor.u32 %v1689_v47, %v1390_v46 }
  0x38   :  { %333 = vmatpush.bf16.msra.mxu0 %v1167_v16  ;;  %v1527_v50 = vor.u32 %v1723_v45, %v1526_v44  ;;  %v1671_v55 = vld [vmem:[#allocation8 + $0x54] sm:$0xf0]  ;;  %v1518_v56 = vld [vmem:[#allocation8 + $0x1e0] sm:$0xf]  ;;  %v1721_v57 = vld [vmem:[#allocation8 + $0x1e4] sm:$0xf0]  ;;  %v1455_v60 = vor.u32 %v1705_v53, %v1454_v52 }
  0x39   :  { %346 = vmatpush.bf16.msra.mxu1 %v1171_v18  ;;  %v1382_v58 = vld [vmem:[#allocation8 + $0xd0] sm:$0xf]  ;;  %v1687_v59 = vld [vmem:[#allocation8 + $0xd4] sm:$0xf0]  ;;  %v1319_v61 = vor.u32 %v1671_v55, %v1318_v51  ;;  %v1519_v62 = vor.u32 %v1721_v57, %v1518_v56  ;;  %v1310_v63 = vld [vmem:[#allocation8 + $0x40] sm:$0xf] }
  0x3a   :  { %359 = vmatpush.bf16.msra.mxu2 %v1175_v19  ;;  %372 = vmatpush.bf16.msra.mxu3 %v1179_v23  ;;  %v1446_v0 = vld [vmem:[#allocation8 + $0x150] sm:$0xf]  ;;  %v1703_v1 = vld [vmem:[#allocation8 + $0x154] sm:$0xf0]  ;;  %v1383_v2 = vor.u32 %v1687_v59, %v1382_v58  ;;  %v1669_v3 = vld [vmem:[#allocation8 + $0x44] sm:$0xf0] }
  0x3b   :  { %v1510_v4 = vld [vmem:[#allocation8 + $0x1d0] sm:$0xf]  ;;  %v1719_v5 = vld [vmem:[#allocation8 + $0x1d4] sm:$0xf0]  ;;  %v1374_v6 = vld [vmem:[#allocation8 + $0xc0] sm:$0xf]  ;;  %v1447_v8 = vor.u32 %v1703_v1, %v1446_v0  ;;  %v1311_v9 = vor.u32 %v1669_v3, %v1310_v63 }
  0x3c   :  { %334 = vmatpush.bf16.msra.mxu0 %v1151_v30  ;;  %v1685_v7 = vld [vmem:[#allocation8 + $0xc4] sm:$0xf0]  ;;  %v1511_v10 = vor.u32 %v1719_v5, %v1510_v4  ;;  %v1302_v11 = vld [vmem:[#allocation8 + $0x30] sm:$0xf]  ;;  %v1438_v12 = vld [vmem:[#allocation8 + $0x140] sm:$0xf] }
  0x3d   :  { %347 = vmatpush.bf16.msra.mxu1 %v1155_v34  ;;  %v1701_v13 = vld [vmem:[#allocation8 + $0x144] sm:$0xf0]  ;;  %v1375_v14 = vor.u32 %v1685_v7, %v1374_v6  ;;  %v1667_v15 = vld [vmem:[#allocation8 + $0x34] sm:$0xf0]  ;;  %v1502_v16 = vld [vmem:[#allocation8 + $0x1c0] sm:$0xf] }
  0x3e   :  { %360 = vmatpush.bf16.msra.mxu2 %v1159_v35  ;;  %373 = vmatpush.bf16.msra.mxu3 %v1163_v36  ;;  %v1717_v17 = vld [vmem:[#allocation8 + $0x1c4] sm:$0xf0]  ;;  %v1366_v18 = vld [vmem:[#allocation8 + $0xb0] sm:$0xf]  ;;  %v1683_v19 = vld [vmem:[#allocation8 + $0xb4] sm:$0xf0]  ;;  %v1439_v20 = vor.u32 %v1701_v13, %v1438_v12  ;;  %v1303_v22 = vor.u32 %v1667_v15, %v1302_v11 }
  0x3f   :  { %335 = vmatmul.bf16.vlgmr.msra.gmra.mxu0 %v124_v41  ;;  %v1294_v21 = vld [vmem:[#allocation8 + $0x20] sm:$0xf]  ;;  %v1503_v23 = vor.u32 %v1717_v17, %v1502_v16  ;;  %v1665_v24 = vld [vmem:[#allocation8 + $0x24] sm:$0xf0]  ;;  %v1430_v25 = vld [vmem:[#allocation8 + $0x130] sm:$0xf]  ;;  %v1367_v27 = vor.u32 %v1683_v19, %v1366_v18 }
  0x40   :  { %777 = vmatpush.bf16.msrb.mxu0 %v1335_v37  ;;  %348 = vmatmul.bf16.vlgmr.msra.gmra.mxu1 %v124_v41  ;;  %v1699_v26 = vld [vmem:[#allocation8 + $0x134] sm:$0xf0]  ;;  %v1358_v28 = vld [vmem:[#allocation8 + $0xa0] sm:$0xf]  ;;  %v1494_v29 = vld [vmem:[#allocation8 + $0x1b0] sm:$0xf]  ;;  %v1295_v33 = vor.u32 %v1665_v24, %v1294_v21 }
  0x41   :  { %790 = vmatpush.bf16.msrb.mxu1 %v1399_v42  ;;  %361 = vmatmul.bf16.vlgmr.msra.gmra.mxu2 %v124_v41  ;;  %v1715_v30 = vld [vmem:[#allocation8 + $0x1b4] sm:$0xf0]  ;;  %v1681_v31 = vld [vmem:[#allocation8 + $0xa4] sm:$0xf0]  ;;  %v1431_v32 = vor.u32 %v1699_v26, %v1430_v25  ;;  %v1286_v35 = vld [vmem:[#allocation8 + $0x10] sm:$0xf] }
  0x42   :  { %374 = vmatmul.bf16.vlgmr.msra.gmra.mxu3 %v124_v41  ;;  %803 = vmatpush.bf16.msrb.mxu2 %v1463_v48  ;;  %v1495_v34 = vor.u32 %v1715_v30, %v1494_v29  ;;  %v1422_v36 = vld [vmem:[#allocation8 + $0x120] sm:$0xf]  ;;  %v1697_v37 = vld [vmem:[#allocation8 + $0x124] sm:$0xf0]  ;;  %v1359_v38 = vor.u32 %v1681_v31, %v1358_v28  ;;  %v1663_v39 = vld [vmem:[#allocation8 + $0x14] sm:$0xf0] }
  0x43   :  { %816 = vmatpush.bf16.msrb.mxu3 %v1527_v50  ;;  %v1486_v40 = vld [vmem:[#allocation8 + $0x1a0] sm:$0xf]  ;;  %v1713_v41 = vld [vmem:[#allocation8 + $0x1a4] sm:$0xf0]  ;;  %v1350_v42 = vld [vmem:[#allocation8 + $0x90] sm:$0xf]  ;;  %v1423_v44 = vor.u32 %v1697_v37, %v1422_v36  ;;  %v1287_v46 = vor.u32 %v1663_v39, %v1286_v35 }
  0x44   :  { %778 = vmatpush.bf16.msrb.mxu0 %v1327_v49  ;;  %v1679_v43 = vld [vmem:[#allocation8 + $0x94] sm:$0xf0]  ;;  %v1278_v45 = vld [vmem:[#allocation8] sm:$0xf]  ;;  %v1487_v47 = vor.u32 %v1713_v41, %v1486_v40  ;;  %v1661_v48 = vld [vmem:[#allocation8 + $0x4] sm:$0xf0] }
  0x45   :  { %791 = vmatpush.bf16.msrb.mxu1 %v1391_v54  ;;  %v1414_v49 = vld [vmem:[#allocation8 + $0x110] sm:$0xf]  ;;  %v1695_v50 = vld [vmem:[#allocation8 + $0x114] sm:$0xf0]  ;;  %v1351_v51 = vor.u32 %v1679_v43, %v1350_v42  ;;  %v1342_v52 = vld [vmem:[#allocation8 + $0x80] sm:$0xf] }
  0x46   :  { %804 = vmatpush.bf16.msrb.mxu2 %v1455_v60  ;;  %v1478_v53 = vld [vmem:[#allocation8 + $0x190] sm:$0xf]  ;;  %v1711_v54 = vld [vmem:[#allocation8 + $0x194] sm:$0xf0]  ;;  %v1677_v55 = vld [vmem:[#allocation8 + $0x84] sm:$0xf0]  ;;  %v1415_v60 = vor.u32 %v1695_v50, %v1414_v49 }
  0x47   :  { %817 = vmatpush.bf16.msrb.mxu3 %v1519_v62  ;;  %v1674_v56 = vld [vmem:[#allocation8 + $0x74] sm:$0xf]  ;;  %v1336_v57 = vld [vmem:[#allocation8 + $0x78] sm:$0xf0]  ;;  %v1479_v62 = vor.u32 %v1711_v54, %v1478_v53  ;;  %v1672_v63 = vld [vmem:[#allocation8 + $0x64] sm:$0xf]  ;;  %v1343_v3 = vor.u32 %v1677_v55, %v1342_v52 }
  0x48   :  { %779 = vmatpush.bf16.msrb.mxu0 %v1319_v61  ;;  %v1690_v58 = vld [vmem:[#allocation8 + $0xf4] sm:$0xf]  ;;  %v1400_v59 = vld [vmem:[#allocation8 + $0xf8] sm:$0xf0]  ;;  %v1279_v61 = vor.u32 %v1661_v48, %v1278_v45  ;;  %v1406_v0 = vld [vmem:[#allocation8 + $0x100] sm:$0xf]  ;;  %v1339_v4 = vor.u32 %v1674_v56, %v1336_v57 }
  0x49   :  { %792 = vmatpush.bf16.msrb.mxu1 %v1383_v2  ;;  %v1693_v1 = vld [vmem:[#allocation8 + $0x104] sm:$0xf0]  ;;  %v1470_v2 = vld [vmem:[#allocation8 + $0x180] sm:$0xf]  ;;  %v1706_v6 = vld [vmem:[#allocation8 + $0x174] sm:$0xf] }
  0x4a   :  { %805 = vmatpush.bf16.msrb.mxu2 %v1447_v8  ;;  %v1709_v5 = vld [vmem:[#allocation8 + $0x184] sm:$0xf0]  ;;  %v1464_v7 = vld [vmem:[#allocation8 + $0x178] sm:$0xf0]  ;;  %v1403_v8 = vor.u32 %v1690_v58, %v1400_v59  ;;  %v1688_v12 = vld [vmem:[#allocation8 + $0xe4] sm:$0xf] }
  0x4b   :  { %818 = vmatpush.bf16.msrb.mxu3 %v1511_v10  ;;  %v1722_v10 = vld [vmem:[#allocation8 + $0x1f4] sm:$0xf]  ;;  %v1528_v11 = vld [vmem:[#allocation8 + $0x1f8] sm:$0xf0]  ;;  %v1392_v13 = vld [vmem:[#allocation8 + $0xe8] sm:$0xf0]  ;;  %v1471_v15 = vor.u32 %v1709_v5, %v1470_v2  ;;  %v1467_v16 = vor.u32 %v1706_v6, %v1464_v7 }
  0x4c   :  { %780 = vmatpush.bf16.msrb.mxu0 %v1311_v9  ;;  %v1328_v9 = vld [vmem:[#allocation8 + $0x68] sm:$0xf0]  ;;  %v1531_v18 = vor.u32 %v1722_v10, %v1528_v11  ;;  %v1395_v19 = vor.u32 %v1688_v12, %v1392_v13  ;;  %v1320_v21 = vld [vmem:[#allocation8 + $0x58] sm:$0xf0]  ;;  %v1704_v26 = vld [vmem:[#allocation8 + $0x164] sm:$0xf] }
  0x4d   :  { %793 = vmatpush.bf16.msrb.mxu1 %v1375_v14  ;;  %v1407_v14 = vor.u32 %v1693_v1, %v1406_v0  ;;  %v1331_v17 = vor.u32 %v1672_v63, %v1328_v9  ;;  %v1384_v24 = vld [vmem:[#allocation8 + $0xd8] sm:$0xf0]  ;;  %v1720_v29 = vld [vmem:[#allocation8 + $0x1e4] sm:$0xf]  ;;  %v1520_v30 = vld [vmem:[#allocation8 + $0x1e8] sm:$0xf0] }
  0x4e   :  { %806 = vmatpush.bf16.msrb.mxu2 %v1439_v20  ;;  %v1670_v20 = vld [vmem:[#allocation8 + $0x54] sm:$0xf]  ;;  %v1523_v31 = vor.u32 %v1720_v29, %v1520_v30  ;;  %v1376_v36 = vld [vmem:[#allocation8 + $0xc8] sm:$0xf0]  ;;  %v1448_v39 = vld [vmem:[#allocation8 + $0x158] sm:$0xf0] }
  0x4f   :  { %819 = vmatpush.bf16.msrb.mxu3 %v1503_v23  ;;  %v1323_v23 = vor.u32 %v1670_v20, %v1320_v21  ;;  %v1718_v40 = vld [vmem:[#allocation8 + $0x1d4] sm:$0xf]  ;;  %v1512_v42 = vld [vmem:[#allocation8 + $0x1d8] sm:$0xf0]  ;;  %v1700_v50 = vld [vmem:[#allocation8 + $0x144] sm:$0xf] }
  0x50   :  { %781 = vmatpush.bf16.msrb.mxu0 %v1303_v22  ;;  %v1686_v22 = vld [vmem:[#allocation8 + $0xd4] sm:$0xf]  ;;  %v1515_v43 = vor.u32 %v1718_v40, %v1512_v42  ;;  %v1304_v45 = vld [vmem:[#allocation8 + $0x38] sm:$0xf0]  ;;  %v1716_v52 = vld [vmem:[#allocation8 + $0x1c4] sm:$0xf] }
  0x51   :  { %794 = vmatpush.bf16.msrb.mxu1 %v1367_v27  ;;  %v1387_v25 = vor.u32 %v1686_v22, %v1384_v24  ;;  %v1456_v27 = vld [vmem:[#allocation8 + $0x168] sm:$0xf0]  ;;  %v1368_v48 = vld [vmem:[#allocation8 + $0xb8] sm:$0xf0]  ;;  %v1664_v56 = vld [vmem:[#allocation8 + $0x24] sm:$0xf] }
  0x52   :  { %807 = vmatpush.bf16.msrb.mxu2 %v1431_v32  ;;  %v1459_v28 = vor.u32 %v1704_v26, %v1456_v27  ;;  %v1668_v32 = vld [vmem:[#allocation8 + $0x44] sm:$0xf]  ;;  %v1504_v54 = vld [vmem:[#allocation8 + $0x1c8] sm:$0xf0]  ;;  %v1432_v63 = vld [vmem:[#allocation8 + $0x138] sm:$0xf0] }
  0x53   :  { %820 = vmatpush.bf16.msrb.mxu3 %v1495_v34  ;;  %v1684_v34 = vld [vmem:[#allocation8 + $0xc4] sm:$0xf]  ;;  %v1507_v55 = vor.u32 %v1716_v52, %v1504_v54  ;;  %v1296_v57 = vld [vmem:[#allocation8 + $0x28] sm:$0xf0]  ;;  %v1714_v0 = vld [vmem:[#allocation8 + $0x1b4] sm:$0xf] }
  0x54   :  { %782 = vmatpush.bf16.msrb.mxu0 %v1295_v33  ;;  %v1312_v33 = vld [vmem:[#allocation8 + $0x48] sm:$0xf0]  ;;  %v1379_v37 = vor.u32 %v1684_v34, %v1376_v36  ;;  %v1680_v58 = vld [vmem:[#allocation8 + $0xa4] sm:$0xf]  ;;  %v1299_v59 = vor.u32 %v1664_v56, %v1296_v57  ;;  %v1496_v2 = vld [vmem:[#allocation8 + $0x1b8] sm:$0xf0] }
  0x55   :  { %795 = vmatpush.bf16.msrb.mxu1 %v1359_v38  ;;  %v1315_v35 = vor.u32 %v1668_v32, %v1312_v33  ;;  %v1702_v38 = vld [vmem:[#allocation8 + $0x154] sm:$0xf]  ;;  %v1288_v5 = vld [vmem:[#allocation8 + $0x18] sm:$0xf0]  ;;  %v1696_v9 = vld [vmem:[#allocation8 + $0x124] sm:$0xf] }
  0x56   :  { %808 = vmatpush.bf16.msrb.mxu2 %v1423_v44  ;;  %v1451_v41 = vor.u32 %v1702_v38, %v1448_v39  ;;  %v1666_v44 = vld [vmem:[#allocation8 + $0x34] sm:$0xf]  ;;  %v1424_v10 = vld [vmem:[#allocation8 + $0x128] sm:$0xf0]  ;;  %v1712_v13 = vld [vmem:[#allocation8 + $0x1a4] sm:$0xf] }
  0x57   :  { %821 = vmatpush.bf16.msrb.mxu3 %v1487_v47  ;;  %v1682_v47 = vld [vmem:[#allocation8 + $0xb4] sm:$0xf]  ;;  %v1427_v12 = vor.u32 %v1696_v9, %v1424_v10  ;;  %v1480_v26 = vld [vmem:[#allocation8 + $0x198] sm:$0xf0]  ;;  %v1408_v29 = vld [vmem:[#allocation8 + $0x108] sm:$0xf0] }
  0x58   :  { %783 = vmatpush.bf16.msrb.mxu0 %v1287_v46  ;;  %v1307_v46 = vor.u32 %v1666_v44, %v1304_v45  ;;  %v1371_v49 = vor.u32 %v1682_v47, %v1368_v48  ;;  %v1678_v6 = vld [vmem:[#allocation8 + $0x94] sm:$0xf]  ;;  %v1708_v30 = vld [vmem:[#allocation8 + $0x184] sm:$0xf]  ;;  %v1472_v32 = vld [vmem:[#allocation8 + $0x188] sm:$0xf0] }
  0x59   :  { %796 = vmatpush.bf16.msrb.mxu1 %v1351_v51  ;;  %v1440_v51 = vld [vmem:[#allocation8 + $0x148] sm:$0xf0]  ;;  %v1694_v22 = vld [vmem:[#allocation8 + $0x114] sm:$0xf]  ;;  %v157_v33 = vld [vmem:[#allocation7] sm:$0xf]  ;;  %v1475_v34 = vor.u32 %v1708_v30, %v1472_v32 }
  0x5a   :  { %809 = vmatpush.bf16.msrb.mxu2 %v1415_v60  ;;  %v1443_v53 = vor.u32 %v1700_v50, %v1440_v51  ;;  %v1360_v60 = vld [vmem:[#allocation8 + $0xa8] sm:$0xf0]  ;;  %v1710_v24 = vld [vmem:[#allocation8 + $0x194] sm:$0xf]  ;;  %v160_v36 = vperm.slane %v157_v33, 1  ;;  %v1731_v44 = vld [vmem:[#allocation10 + $0x38] sm:$0xff] }
  0x5b   :  { %822 = vmatpush.bf16.msrb.mxu3 %v1479_v62  ;;  %v1698_v62 = vld [vmem:[#allocation8 + $0x134] sm:$0xf]  ;;  %v1483_v27 = vor.u32 %v1710_v24, %v1480_v26  ;;  %v1733_v9 = vld [vmem:[#allocation10 + $0x48] sm:$0xff]  ;;  %s1133_s23 = sshll.u32 %s1953_s1, 4  ;;  %s1135_s26 = sshll.u32 %s2043_s9, 4  ;;  %s1134_s23 = int_to_ptr.vmem [resolvable:$true] %s1133_s23  ;;  %s1136_s26 = int_to_ptr.hbm [resolvable:$true] %s1135_s26 }
  0x5c   :  { %784 = vmatpush.bf16.msrb.mxu0 %v1279_v61  ;;  %v1363_v61 = vor.u32 %v1680_v58, %v1360_v60  ;;  %v1435_v1 = vor.u32 %v1698_v62, %v1432_v63  ;;  %v1730_v52 = vld [vmem:[#allocation10 + $0x30] sm:$0xff]  ;;  %v1729_v58 = vld [vmem:[#allocation10 + $0x28] sm:$0xff]  ;;  %v1728_v62 = vld [vmem:[#allocation10 + $0x20] sm:$0xff] }
  0x5d   :  { %797 = vmatpush.bf16.msrb.mxu1 %v1343_v3  ;;  %v1499_v3 = vor.u32 %v1714_v0, %v1496_v2  ;;  %v1739_v63 = vld [vmem:[#allocation10 + $0x78] sm:$0xff]  ;;  %v1738_v2 = vld [vmem:[#allocation10 + $0x70] sm:$0xff] }
  0x5e   :  { %810 = vmatpush.bf16.msrb.mxu2 %v1407_v14  ;;  %v1488_v14 = vld [vmem:[#allocation8 + $0x1a8] sm:$0xf0]  ;;  %v1727_v0 = vld [vmem:[#allocation10 + $0x18] sm:$0xff]  ;;  %v451_v10 = vld [vmem:[%s2038_s4] sm:$0x3] }
  0x5f   :  { %823 = vmatpush.bf16.msrb.mxu3 %v1471_v15  ;;  %v1660_v15 = vld [vmem:[#allocation8 + $0x4] sm:$0xf] }
  0x60   :  { %829 = vmatpush.bf16.msra.mxu0 %v1339_v4  ;;  %v1662_v4 = vld [vmem:[#allocation8 + $0x14] sm:$0xf] }
  0x61   :  { %842 = vmatpush.bf16.msra.mxu1 %v1403_v8  ;;  %v1291_v7 = vor.u32 %v1662_v4, %v1288_v5  ;;  %v1352_v8 = vld [vmem:[#allocation8 + $0x98] sm:$0xf0]  ;;  %v1737_v4 = vld [vmem:[#allocation10 + $0x68] sm:$0xff]  ;;  %v1724_v5 = vld [vmem:[#allocation10] sm:$0xff] }
  0x62   :  { %855 = vmatpush.bf16.msra.mxu2 %v1467_v16  ;;  %v1355_v11 = vor.u32 %v1678_v6, %v1352_v8  ;;  %v1491_v16 = vor.u32 %v1712_v13, %v1488_v14  ;;  %v1736_v6 = vld [vmem:[#allocation10 + $0x60] sm:$0xff]  ;;  %v1734_v8 = vld [vmem:[#allocation10 + $0x50] sm:$0xff]  ;;  %v453_v13 = vperm.slane %v451_v10, 0 }
  0x63   :  { %868 = vmatpush.bf16.msra.mxu3 %v1531_v18  ;;  %v1676_v18 = vld [vmem:[#allocation8 + $0x84] sm:$0xf] }
  0x64   :  { %830 = vmatpush.bf16.msra.mxu0 %v1331_v17  ;;  %v1280_v17 = vld [vmem:[#allocation8 + $0x8] sm:$0xf0]  ;;  %v1732_v14 = vld [vmem:[#allocation10 + $0x40] sm:$0xff] }
  0x65   :  { %843 = vmatpush.bf16.msra.mxu1 %v1395_v19  ;;  %v1344_v19 = vld [vmem:[#allocation8 + $0x88] sm:$0xf0]  ;;  %v1283_v20 = vor.u32 %v1660_v15, %v1280_v17 }
  0x66   :  { %856 = vmatpush.bf16.msra.mxu2 %v1459_v28  ;;  %v1347_v21 = vor.u32 %v1676_v18, %v1344_v19  ;;  %v1692_v28 = vld [vmem:[#allocation8 + $0x104] sm:$0xf]  ;;  %v1746_v18 = vld [vmem:[#allocation11 + $0x30] sm:$0xff] }
  0x67   :  { %869 = vmatpush.bf16.msra.mxu3 %v1523_v31  ;;  %v1411_v31 = vor.u32 %v1692_v28, %v1408_v29  ;;  %v454_v29 = vperm.slane %v451_v10, 1 }
  0x68   :  { %831 = vmatpush.bf16.msra.mxu0 %v1323_v23  ;;  %v1416_v23 = vld [vmem:[#allocation8 + $0x118] sm:$0xf0] }
  0x69   :  { %844 = vmatpush.bf16.msra.mxu1 %v1387_v25  ;;  %v1419_v25 = vor.u32 %v1694_v22, %v1416_v23 }
  0x6a   :  { %857 = vmatpush.bf16.msra.mxu2 %v1451_v41 }
  0x6b   :  { %870 = vmatpush.bf16.msra.mxu3 %v1515_v43  ;;  %v161_v43 = vperm.slane %v157_v33, 2 }
  0x6c   :  { %832 = vmatpush.bf16.msra.mxu0 %v1315_v35  ;;  %v159_v35 = vperm.slane %v157_v33, 0 }
  0x6d   :  { %845 = vmatpush.bf16.msra.mxu1 %v1379_v37 }
  0x6e   :  { %858 = vmatpush.bf16.msra.mxu2 %v1443_v53 }
  0x6f   :  { %871 = vmatpush.bf16.msra.mxu3 %v1507_v55 }
  0x70   :  { %833 = vmatpush.bf16.msra.mxu0 %v1307_v46  ;;  %v162_v46 = vperm.slane %v157_v33, 3 }
  0x71   :  { %846 = vmatpush.bf16.msra.mxu1 %v1371_v49 }
  0x72   :  { %859 = vmatpush.bf16.msra.mxu2 %v1435_v1  ;;  %v1726_v1 = vld [vmem:[#allocation10 + $0x10] sm:$0xff] }
  0x73   :  { %872 = vmatpush.bf16.msra.mxu3 %v1499_v3  ;;  %v1725_v3 = vld [vmem:[#allocation10 + $0x8] sm:$0xff] }
  0x74   :  { %834 = vmatpush.bf16.msra.mxu0 %v1299_v59 }
  0x75   :  { %847 = vmatpush.bf16.msra.mxu1 %v1363_v61 }
  0x76   :  { %860 = vmatpush.bf16.msra.mxu2 %v1427_v12 }
  0x77   :  { %873 = vmatpush.bf16.msra.mxu3 %v1491_v16  ;;  %v1747_v16 = vld [vmem:[#allocation11 + $0x38] sm:$0xff] }
  0x78   :  { %835 = vmatpush.bf16.msra.mxu0 %v1291_v7  ;;  %v1735_v7 = vld [vmem:[#allocation10 + $0x58] sm:$0xff] }
  0x79   :  { %848 = vmatpush.bf16.msra.mxu1 %v1355_v11 }
  0x7a   :  { %861 = vmatpush.bf16.msra.mxu2 %v1419_v25 }
  0x7b   :  { %874 = vmatpush.bf16.msra.mxu3 %v1483_v27 }
  0x7c   :  { %836 = vmatpush.bf16.msra.mxu0 %v1283_v20 }
  0x7d   :  { %849 = vmatpush.bf16.msra.mxu1 %v1347_v21 }
  0x7e   :  { %862 = vmatpush.bf16.msra.mxu2 %v1411_v31 }
  0x7f   :  { %875 = vmatpush.bf16.msra.mxu3 %v1475_v34 }
  0xbc   :  { %v336_v37 = vpop.f32.mrf.mxu0 }
  0xbd   :  { %v337_v38 = vadd.f32 %v336_v37, %v159_v35  ;;  %v349_v39 = vpop.f32.mrf.mxu1 }
  0xbe   :  { %v350_v40 = vadd.f32 %v349_v39, %v160_v36 }
  0xbf   :  { %v379_v41 = vmax.f32 %v337_v38, 0.0 }
  0xc0   :  { %v380_v42 = vmax.f32 %v350_v40, 0.0 }
  0xc1   :  { %v383_v45 = vpack.c.bf16 %v379_v41, %v379_v41 }
  0xc2   :  { %v384_v47 = vpack.c.bf16 %v380_v42, %v380_v42 }
  0xc3   :  { %785 = vmatmul.bf16.vlgmr.msrb.gmra.mxu0 %v383_v45 }
  0xc4   :  { %v362_v48 = vpop.f32.mrf.mxu2  ;;  %798 = vmatmul.bf16.vlgmr.msrb.gmra.mxu1 %v384_v47  ;;  %v338_v51 = vpop.f32.mrf.mxu0  ;;  %1017 = vmatpush.bf16.msrb.mxu0 %v1731_v44  ;;  %v1745_v44 = vld [vmem:[#allocation11 + $0x28] sm:$0xff] }
  0xc5   :  { %v363_v49 = vadd.f32 %v362_v48, %v161_v43  ;;  %v375_v50 = vpop.f32.mrf.mxu3  ;;  %v351_v54 = vpop.f32.mrf.mxu1  ;;  %1030 = vmatpush.bf16.msrb.mxu1 %v1739_v63  ;;  %v1741_v48 = vld [vmem:[#allocation11 + $0x8] sm:$0xff] }
  0xc6   :  { %v376_v53 = vadd.f32 %v375_v50, %v162_v46  ;;  %v1743_v46 = vld [vmem:[#allocation11 + $0x18] sm:$0xff] }
  0xc7   :  { %v381_v55 = vmax.f32 %v363_v49, 0.0  ;;  %v1740_v49 = vld [vmem:[#allocation11] sm:$0xff] }
  0xc8   :  { %v382_v56 = vmax.f32 %v376_v53, 0.0  ;;  %1018 = vmatpush.bf16.msrb.mxu0 %v1730_v52  ;;  %v1761_v52 = vld [vmem:[%s2040_s6] ss:$0 sm:$0xff] }
  0xc9   :  { %v385_v57 = vpack.c.bf16 %v381_v55, %v381_v55  ;;  %1031 = vmatpush.bf16.msrb.mxu1 %v1738_v2 }
  0xca   :  { %v386_v59 = vpack.c.bf16 %v382_v56, %v382_v56 }
  0xcb   :  { %811 = vmatmul.bf16.vlgmr.msrb.gmra.mxu2 %v385_v57 }
  0xcc   :  { %824 = vmatmul.bf16.vlgmr.msrb.gmra.mxu3 %v386_v59  ;;  %v364_v60 = vpop.f32.mrf.mxu2  ;;  %1019 = vmatpush.bf16.msrb.mxu0 %v1729_v58 }
  0xcd   :  { %v377_v61 = vpop.f32.mrf.mxu3  ;;  %1032 = vmatpush.bf16.msrb.mxu1 %v1737_v4  ;;  %1113 = vmatpush.bf16.msrb.mxu2 %v1747_v16 }
  0xd0   :  { %1020 = vmatpush.bf16.msrb.mxu0 %v1728_v62 }
  0xd1   :  { %1033 = vmatpush.bf16.msrb.mxu1 %v1736_v6  ;;  %1114 = vmatpush.bf16.msrb.mxu2 %v1746_v18 }
  0xd3   :  { %837 = vmatmul.bf16.vlgmr.msra.gmra.mxu0 %v383_v45  ;;  %v1744_v45 = vld [vmem:[#allocation11 + $0x20] sm:$0xff] }
  0xd4   :  { %850 = vmatmul.bf16.vlgmr.msra.gmra.mxu1 %v384_v47  ;;  %1021 = vmatpush.bf16.msrb.mxu0 %v1727_v0  ;;  %v1742_v47 = vld [vmem:[#allocation11 + $0x10] sm:$0xff] }
  0xd5   :  { %1034 = vmatpush.bf16.msrb.mxu1 %v1735_v7  ;;  %1115 = vmatpush.bf16.msrb.mxu2 %v1745_v44 }
  0xd8   :  { %1022 = vmatpush.bf16.msrb.mxu0 %v1726_v1 }
  0xd9   :  { %1035 = vmatpush.bf16.msrb.mxu1 %v1734_v8  ;;  %1116 = vmatpush.bf16.msrb.mxu2 %v1744_v45 }
  0xdb   :  { %863 = vmatmul.bf16.vlgmr.msra.gmra.mxu2 %v385_v57 }
  0xdc   :  { %876 = vmatmul.bf16.vlgmr.msra.gmra.mxu3 %v386_v59  ;;  %1023 = vmatpush.bf16.msrb.mxu0 %v1725_v3  ;;  %v1762_v59 = vld [vmem:[%s2042_s8] ss:$0 sm:$0xff] }
  0xdd   :  { %1036 = vmatpush.bf16.msrb.mxu1 %v1733_v9  ;;  %1117 = vmatpush.bf16.msrb.mxu2 %v1743_v46 }
  0xe0   :  { %1024 = vmatpush.bf16.msrb.mxu0 %v1724_v5 }
  0xe1   :  { %1037 = vmatpush.bf16.msrb.mxu1 %v1732_v14  ;;  %1118 = vmatpush.bf16.msrb.mxu2 %v1742_v47 }
  0xe5   :  { %1119 = vmatpush.bf16.msrb.mxu2 %v1741_v48 }
  0xe9   :  { %1120 = vmatpush.bf16.msrb.mxu2 %v1740_v49 }
 0x140   :  { %v786_v11 = vpop.f32.mrf.mxu0 }
 0x141   :  { %v799_v12 = vpop.f32.mrf.mxu1  ;;  %v787_v15 = vadd.f32 %v786_v11, %v453_v13 }
 0x143   :  { %v800_v20 = vadd.f32 %v799_v12, %v787_v15 }
 0x148   :  { %v788_v17 = vpop.f32.mrf.mxu0 }
 0x149   :  { %v801_v19 = vpop.f32.mrf.mxu1 }
 0x14e   :  { %v812_v21 = vpop.f32.mrf.mxu2 }
 0x14f   :  { %v813_v22 = vadd.f32 %v812_v21, %v800_v20  ;;  %v825_v23 = vpop.f32.mrf.mxu3 }
 0x150   :  { %v838_v25 = vpop.f32.mrf.mxu0 }
 0x151   :  { %v826_v24 = vadd.f32 %v825_v23, %v813_v22  ;;  %v851_v26 = vpop.f32.mrf.mxu1  ;;  %v839_v32 = vadd.f32 %v838_v25, %v454_v29 }
 0x153   :  { %v881_v27 = vmax.f32 %v826_v24, 0.0  ;;  %v852_v35 = vadd.f32 %v851_v26, %v839_v32 }
 0x155   :  { %v883_v28 = vpack.c.bf16 %v881_v27, %v881_v27 }
 0x156   :  { %v814_v30 = vpop.f32.mrf.mxu2 }
 0x157   :  { %v827_v31 = vpop.f32.mrf.mxu3  ;;  %1025 = vmatmul.bf16.vlgmr.msrb.gmra.mxu0 %v883_v28 }
 0x158   :  { %v840_v33 = vpop.f32.mrf.mxu0 }
 0x159   :  { %v853_v34 = vpop.f32.mrf.mxu1 }
 0x15e   :  { %v864_v36 = vpop.f32.mrf.mxu2 }
 0x15f   :  { %v865_v37 = vadd.f32 %v864_v36, %v852_v35  ;;  %v877_v38 = vpop.f32.mrf.mxu3 }
 0x161   :  { %v878_v39 = vadd.f32 %v877_v38, %v865_v37 }
 0x163   :  { %v882_v40 = vmax.f32 %v878_v39, 0.0 }
 0x165   :  { %v884_v41 = vpack.c.bf16 %v882_v40, %v882_v40 }
 0x166   :  { %v866_v42 = vpop.f32.mrf.mxu2 }
 0x167   :  { %v879_v43 = vpop.f32.mrf.mxu3  ;;  %1038 = vmatmul.bf16.vlgmr.msrb.gmra.mxu1 %v884_v41 }
 0x1d4   :  { %v1026_v50 = vpop.f32.mrf.mxu0 }
 0x1d5   :  { %v1027_v53 = vadd.f32 %v1761_v52, %v1026_v50 }
 0x1dc   :  { %v1028_v51 = vpop.f32.mrf.mxu0 }
 0x1e4   :  { %v1039_v54 = vpop.f32.mrf.mxu1 }
 0x1e5   :  { %v1040_v55 = vadd.f32 %v1039_v54, %v1027_v53 }
 0x1e7   :  { %v1043_v56 = vmax.f32 %v1040_v55, 0.0 }
 0x1e9   :  { %v1044_v57 = vpack.c.bf16 %v1043_v56, %v1043_v56 }
 0x1eb   :  { %1121 = vmatmul.bf16.vlgmr.msrb.gmra.mxu2 %v1044_v57 }
 0x1ec   :  { %v1041_v58 = vpop.f32.mrf.mxu1 }
 0x26e   :  { %v1122_v60 = vpop.f32.mrf.mxu2 }
 0x26f   :  { %v1123_v61 = vadd.f32 %v1762_v59, %v1122_v60 }
 0x271   :  { %v1126_v62 = vpack.c.bf16 %v1123_v61, %v1123_v61 }
 0x273   :  { %1127 = vst [vmem:[#allocation13] sm:$0xf] %v1126_v62 }
 0x274   :  { %1138 = dma.vmem_to_hbm [thread:$0]  %s1134_s23, 64, %s1136_s26, [#allocation4]  }
 0x276   :  { %v1124_v63 = vpop.f32.mrf.mxu2 }
 0x277   :  { %1939 = dma.done.wait [#allocation4], 64  }
 0x278   :  { %1940 = vsyncadd [#allocation4], 4294967232 }
 0x279   :  { %1143 = vsyncpa [#allocation3], 1 }
 0x27a   :  { %1144 = vsyncpa [#allocation6], 1 }
 0x27b   :  { %1145 = vsyncpa [#allocation9], 1 }
 0x27c   :  { %1146 = vsyncpa [#allocation12], 1 }
 0x27d   :  { %1147 = vsyncpa [#allocation4], 1 }

</bundles_post_ra>
